<compile_context>
chip_gen: v7x
topology: tpu7x:2x2x1
jax: 0.10.0
libtpu: 0.0.40
codegen_flags: <defaults>
</compile_context>

<pallas_src>
import functools
import math

import jax
import jax.numpy as jnp
from jax import lax
from jax.experimental import pallas as pl
from jax.experimental.pallas import tpu as pltpu


# ----------------------------- helpers --------------------------------------

def _to_i32(v):
    """Python int -> value representable as int32 (two's-complement wrap)."""
    v &= 0xFFFFFFFF
    return v - (1 << 32) if v >= (1 << 31) else v


def _lsr(x, n):
    """Logical right shift on int32 arrays using only jnp ops (portable)."""
    return (x >> n) & jnp.int32((1 << (32 - n)) - 1)


def _splitmix32_i32(x):
    """splitmix32 finalizer on int32 with wrap-around semantics.

    Bit-identical to the uint32 version; uses only xor / logical-shift / mul,
    which lower on both Mosaic (VPU) and the CPU interpreter.
    """
    x = x ^ _lsr(x, 16)
    x = x * jnp.int32(_to_i32(0x7FEB352D))
    x = x ^ _lsr(x, 15)
    x = x * jnp.int32(_to_i32(0x846CA68B))
    x = x ^ _lsr(x, 16)
    return x


# ----------------------------- kernels --------------------------------------

def _pe_add_kernel(x_ref, pe_ref, o_ref):
    # x_ref / o_ref: (ts, B, td); pe_ref: (ts, 1, td).
    # Single dense VPU add; broadcast over batch happens in the add; store is
    # lane-dense on td (multiple of 128 or the full D).
    o_ref[...] = (x_ref[...] + pe_ref[...]).astype(o_ref.dtype)


def _pe_add_dropout_kernel(x_ref, pe_ref, o_ref, *, ts, td, B, D, p, seed_mix):
    # Training path: inverted dropout.
    # NOTE: random stream cannot bit-match torch; Bernoulli(1-p) keep +
    # 1/(1-p) scaling semantics are preserved.
    i = pl.program_id(0)
    j = pl.program_id(1)
    shape = x_ref.shape                              # (ts, B, td)

    # Global element index (distinct per tile) -> counter hash -> 31-bit uniform.
    gs = lax.broadcasted_iota(jnp.int32, shape, 0) + i * ts
    gb = lax.broadcasted_iota(jnp.int32, shape, 1)
    gd = lax.broadcasted_iota(jnp.int32, shape, 2) + j * td
    flat = (gs * B + gb) * D + gd                    # int32, wraps harmlessly
    bits = _splitmix32_i32(flat ^ jnp.int32(seed_mix))
    r31 = _lsr(bits, 1)                              # in [0, 2^31)
    thresh = jnp.int32(min(int(round(p * 2147483648.0)), 2147483647))
    keep = r31 >= thresh                             # P(keep) = 1 - p (within 2^-31)

    scale = jnp.asarray(1.0 / (1.0 - p), dtype=x_ref.dtype)
    y = x_ref[...] + pe_ref[...]
    o_ref[...] = jnp.where(keep, y * scale, 0.0).astype(o_ref.dtype)


# ----------------------------- module glue ----------------------------------

def make_positional_encoding(d_model, max_len=20, dtype=jnp.float32):
    """Deterministic pe buffer, identical to the PyTorch __init__."""
    position = jnp.arange(max_len, dtype=jnp.float32)[:, None]            # (max_len, 1)
    div_term = jnp.exp(
        jnp.arange(0, d_model, 2, dtype=jnp.float32) * (-math.log(10000.0) / d_model)
    )                                                                      # (d_model//2,)
    pe = jnp.zeros((max_len, 1, d_model), dtype=jnp.float32)
    pe = pe.at[:, 0, 0::2].set(jnp.sin(position * div_term))
    pe = pe.at[:, 0, 1::2].set(jnp.cos(position * div_term))
    return pe.astype(dtype)


def _choose_seq_tile(S, row_bytes, block_bytes):
    """Largest ts dividing S with a (ts, B, D) block under block_bytes."""
    cands = [t for t in range(1, S + 1) if S % t == 0 and t * row_bytes <= block_bytes]
    return max(cands) if cands else 1


def _choose_feat_tile(B, D, itemsize, block_bytes):
    """Feature tile (multiple of 128) when a single (B, D) row exceeds block_bytes."""
    if D % 128 == 0:
        cands = [t for t in range(128, D + 1, 128)
                 if D % t == 0 and B * t * itemsize <= block_bytes]
        if cands:
            return max(cands)
        return 128
    # TODO(synk): D not lane-aligned and B*D too large for one block; fall back
    # to a single oversized feature block (raises VMEM demand).
    return D


def positional_encoding_forward(x, pe, *, p=0.1, training=False, seed=0,
                                block_bytes=4 * 1024 * 1024):
    """x: (S, B, D); pe: (max_len, 1, D). Returns (S, B, D)."""
    S, B, D = x.shape
    assert S <= pe.shape[0], "sequence longer than max_len"
    itemsize = jnp.dtype(x.dtype).itemsize

    pe2 = pe[:S].astype(x.dtype)          # (S, 1, D); cast once, add stays in x dtype

    # ---- tiling: 1-D over seq normally; fall back to a feature axis if needed
    row_bytes = B * D * itemsize
    if row_bytes <= block_bytes:
        td = D
        ts = _choose_seq_tile(S, row_bytes, block_bytes)
    else:
        ts = 1
        td = _choose_feat_tile(B, D, itemsize, block_bytes)
    if D % td:
        td = D                            # ragged fallback: single feature block
    ns = S // ts
    nd = D // td

    x_spec = pl.BlockSpec((ts, B, td), lambda i, j: (i, 0, j))
    pe_spec = pl.BlockSpec((ts, 1, td), lambda i, j: (i, 0, j))
    out_spec = pl.BlockSpec((ts, B, td), lambda i, j: (i, 0, j))
    out_shape = jax.ShapeDtypeStruct((S, B, D), x.dtype)

    # VMEM budget: x + out double-buffered, pe double-buffered, headroom.
    blk_x = ts * B * td * itemsize
    blk_pe = ts * td * itemsize
    vmem_needed = 4 * blk_x + 2 * blk_pe + (2 << 20)
    vmem_limit = int(min(max(vmem_needed, 16 << 20), 48 << 20))   # stays under v7x 64 MiB

    cparams = pltpu.CompilerParams(
        dimension_semantics=("parallel", "parallel"),
        vmem_limit_bytes=vmem_limit,
    )

    if (not training) or p <= 0.0:
        kern = _pe_add_kernel
    else:
        # Fold the seed into a 32-bit mix constant (static; distinct per-element
        # streams come from the global-index hash inside the kernel).
        seed_mix = _to_i32(int(seed) * 0x9E3779B9 + 0x85EBCA6B)
        kern = functools.partial(
            _pe_add_dropout_kernel, ts=ts, td=td, B=B, D=D,
            p=float(p), seed_mix=seed_mix)

    return pl.pallas_call(
        kern,
        out_shape=out_shape,
        grid=(ns, nd),
        in_specs=[x_spec, pe_spec],
        out_specs=out_spec,
        compiler_params=cparams,
    )(x, pe2)


# ----------------------------- demo / check ---------------------------------

if __name__ == "__main__":
    d_model = 128     # lane-dense (multiple of 128)
    max_len = 20
    seq_len = 8
    batch = 8

    key = jax.random.PRNGKey(0)
    x = jax.random.normal(key, (seq_len, batch, d_model), dtype=jnp.float32)
    pe = make_positional_encoding(d_model, max_len=max_len)

    ref = x + pe[:seq_len]            # plain-JAX reference of the eval forward

    # 1) Eval path, default tiling (single block at this tiny size).
    y = jax.block_until_ready(positional_encoding_forward(x, pe, p=0.1, training=False))
    assert y.shape == (seq_len, batch, d_model)
    assert jnp.allclose(y, ref, atol=1e-6, rtol=1e-6)

    # 2) Eval path forced onto a multi-block grid (exercises tiling / index maps).
    y_tiled = jax.block_until_ready(
        positional_encoding_forward(x, pe, p=0.1, training=False, block_bytes=8192))
    assert jnp.allclose(y_tiled, ref, atol=1e-6, rtol=1e-6)

    # 3) Training path: inverted dropout (mask cannot bit-match torch; semantics only).
    p = 0.25
    yd = jax.block_until_ready(
        positional_encoding_forward(x, pe, p=p, training=True, seed=123, block_bytes=8192))
    kept = yd != 0
    expected = jnp.where(kept, ref / (1.0 - p), 0.0)
    assert jnp.allclose(yd, expected, atol=1e-5, rtol=1e-5)
    drop_frac = 1.0 - float(jnp.mean(kept.astype(jnp.float32)))
    assert 0.05 < drop_frac < 0.6       # loose sanity band around p = 0.25

    print("KERNEL_OK")
</pallas_src>

<mosaic_0001>
module attributes {stable_mosaic.version = 11 : i64} {
  func.func @_pe_add_kernel(%arg0: i32, %arg1: i32, %arg2: memref<8x8x128xf32, #tpu.memory_space<vmem>>, %arg3: memref<8x1x128xf32, #tpu.memory_space<vmem>>, %arg4: memref<8x8x128xf32, #tpu.memory_space<vmem>>) attributes {dimension_semantics = [#tpu.dimension_semantics<parallel>, #tpu.dimension_semantics<parallel>], iteration_bounds = array<i64: 1, 1>, scalar_prefetch = 0 : i64, scratch_operands = 0 : i64, tpu.core_type = #tpu.core_type<tc>, window_params = [{transform_indices = @transform_0, window_bounds = array<i64: 8, 8, 128>}, {transform_indices = @transform_1, window_bounds = array<i64: 8, 1, 128>}, {transform_indices = @transform_2, window_bounds = array<i64: 8, 8, 128>}]} {
    %c0 = arith.constant 0 : index
    %c0_0 = arith.constant 0 : index
    %c0_1 = arith.constant 0 : index
    %0 = vector.load %arg2[%c0, %c0_0, %c0_1] : memref<8x8x128xf32, #tpu.memory_space<vmem>>, vector<8x8x128xf32>
    %c0_2 = arith.constant 0 : index
    %c0_3 = arith.constant 0 : index
    %c0_4 = arith.constant 0 : index
    %1 = vector.load %arg3[%c0_2, %c0_3, %c0_4] : memref<8x1x128xf32, #tpu.memory_space<vmem>>, vector<8x1x128xf32>
    %2 = vector.broadcast %1 : vector<8x1x128xf32> to vector<8x8x128xf32>
    %3 = arith.addf %0, %2 : vector<8x8x128xf32>
    %c0_5 = arith.constant 0 : index
    %c0_6 = arith.constant 0 : index
    %c0_7 = arith.constant 0 : index
    %4 = vector.load %arg4[%c0_5, %c0_6, %c0_7] : memref<8x8x128xf32, #tpu.memory_space<vmem>>, vector<8x8x128xf32>
    tpu.vector_store %arg4[%c0_5, %c0_6, %c0_7], %3 {strides = array<i32>} : memref<8x8x128xf32, #tpu.memory_space<vmem>>, vector<8x8x128xf32>,
    return
  }
  func.func @transform_0(%arg0: i32, %arg1: i32) -> (i32, i32, i32) {
    %c0_i32 = arith.constant 0 : i32
    %c0_i32_0 = arith.constant 0 : i32
    return %arg0, %c0_i32, %arg1 : i32, i32, i32
  }
  func.func @transform_1(%arg0: i32, %arg1: i32) -> (i32, i32, i32) {
    %c0_i32 = arith.constant 0 : i32
    %c0_i32_0 = arith.constant 0 : i32
    return %arg0, %c0_i32, %arg1 : i32, i32, i32
  }
  func.func @transform_2(%arg0: i32, %arg1: i32) -> (i32, i32, i32) {
    %c0_i32 = arith.constant 0 : i32
    %c0_i32_0 = arith.constant 0 : i32
    return %arg0, %c0_i32, %arg1 : i32, i32, i32
  }
}

</mosaic_0001>

<bundles_post_ra>
// kernel: tpu_custom_call.1
= control target key start
LH: loop header
LB: loop body
LE: loop exit
PB: predicated region body
PF: predicated region fallthrough
CT: control target
= control target key end

     0   :  { %7 = vsyncpa [#allocation3], 0  ;;  %s289_s0 = inlined_call_operand.hbm [shape: f32[8,8,128], index: 0, kind: input, shape index: {}]   ;;  %s290_s1 = inlined_call_operand.hbm [shape: f32[8,1,128], index: 1, kind: input, shape index: {}]   ;;  %s291_s2 = inlined_call_operand.hbm [shape: f32[8,8,128], index: 2, kind: output, shape index: {}]  }
   0x1   :  { %8 = vsyncpa [#allocation6], 0 }
   0x2   :  { %9 = vsyncpa [#allocation4], 0  ;;  %s225_s9 = smov [#allocation2]   ;;  %s153_s13 = scalar_lea.hbm %s289_s0, 1024 }
   0x3   :  { %s15_s10 = sshll.u32 %s225_s9, 4  ;;  %p154_p0 = scmp.ne.s32.totalorder %s289_s0, %s153_s13  ;;  %s16_s10 = int_to_ptr.vmem [resolvable:$true] %s15_s10 }
   0x4   :  { %p157_p1 = scmp.lt.u32.totalorder %s153_s13, %s289_s0 }
   0x6   :  { %p159_p2 = pnand %p157_p1, %p154_p0 }
   0x8   :  { %162 = shalt.err (!%p159_p2)
}
   0x9   :  { %s163_s18 = scalar_lea.vmem %s16_s10, 1024  ;;  %p168_p4 = scmp.lt.s32.totalorder %s16_s10, %s16_s10 }
   0xa   :  { %p164_p3 = scmp.ne.s32.totalorder %s16_s10, %s163_s18  ;;  %p169_p5 = scmp.lt.s32.totalorder %s163_s18, %s163_s18 }
   0xc   :  { %p170_p6 = por %p169_p5, %p168_p4 }
   0xe   :  { %p171_p7 = pnand %p170_p6, %p164_p3 }
  0x10   :  { %174 = shalt.err (!%p171_p7)
}
  0x11   :  { %s226_s19 = smov 128   ;;  %s227_s20 = smov 8  }
  0x12   :  { %21 = dma.hbm_to_vmem [thread:$0]  %s289_s0, 1024, %s16_s10, [#allocation3], %s226_s19, %s226_s19, %s227_s20  }
  0x13   :  { %s228_s23 = smov [#allocation5]   ;;  %s175_s27 = scalar_lea.hbm %s290_s1, 128 }
  0x14   :  { %s27_s24 = sshll.u32 %s228_s23, 4  ;;  %p176_p8 = scmp.ne.s32.totalorder %s290_s1, %s175_s27  ;;  %s28_s24 = int_to_ptr.vmem [resolvable:$true] %s27_s24 }
  0x15   :  { %p179_p9 = scmp.lt.u32.totalorder %s175_s27, %s290_s1 }
  0x17   :  { %p181_p10 = pnand %p179_p9, %p176_p8 }
  0x19   :  { %184 = shalt.err (!%p181_p10)
}
  0x1a   :  { %s185_s4 = scalar_lea.vmem %s28_s24, 128  ;;  %p190_p12 = scmp.lt.s32.totalorder %s28_s24, %s28_s24 }
  0x1b   :  { %p186_p11 = scmp.ne.s32.totalorder %s28_s24, %s185_s4  ;;  %p191_p13 = scmp.lt.s32.totalorder %s185_s4, %s185_s4 }
  0x1d   :  { %p192_p0 = por %p191_p13, %p190_p12 }
  0x1f   :  { %p193_p1 = pnand %p192_p0, %p186_p11 }
  0x21   :  { %196 = shalt.err (!%p193_p1)
}
  0x22   :  { %s229_s0 = smov 16   ;;  %s230_s5 = smov 1  }
  0x23   :  { %33 = dma.hbm_to_vmem [thread:$0]  %s290_s1, 128, %s28_s24, [#allocation6], %s229_s0, %s229_s0, %s230_s5  }
  0x24   :  { %219 = dma.done.wait [#allocation3], 1024  }
  0x25   :  { %220 = vsyncadd [#allocation3], 4294966272 }
  0x26   :  { %221 = dma.done.wait [#allocation6], 128  }
  0x27   :  { %222 = vsyncadd [#allocation6], 4294967168  ;;  %v40_v0 = vld [vmem:[#allocation2] sm:$0xff]  ;;  %v41_v2 = vld [vmem:[#allocation2 + $0x8] sm:$0xff]  ;;  %s231_s1 = smov [#allocation7]  }
  0x28   :  { %v138_v1 = vld [vmem:[#allocation5] ss:$0 sm:$0xff]  ;;  %v139_v4 = vld [vmem:[#allocation5 + $0x1] ss:$0 sm:$0xff]  ;;  %v42_v5 = vld [vmem:[#allocation2 + $0x10] sm:$0xff]  ;;  %s125_s8 = sshll.u32 %s231_s1, 4  ;;  %s126_s8 = int_to_ptr.vmem [resolvable:$true] %s125_s8 }
  0x29   :  { %v104_v3 = vadd.f32 %v138_v1, %v40_v0  ;;  %v140_v6 = vld [vmem:[#allocation5 + $0x2] ss:$0 sm:$0xff]  ;;  %v105_v7 = vadd.f32 %v139_v4, %v41_v2  ;;  %v43_v9 = vld [vmem:[#allocation2 + $0x18] sm:$0xff]  ;;  %v141_v10 = vld [vmem:[#allocation5 + $0x3] ss:$0 sm:$0xff]  ;;  %s197_s9 = scalar_lea.vmem %s126_s8, 1024  ;;  %p202_p3 = scmp.lt.s32.totalorder %s126_s8, %s126_s8 }
  0x2a   :  { %v106_v8 = vadd.f32 %v140_v6, %v42_v5  ;;  %v44_v11 = vld [vmem:[#allocation2 + $0x20] sm:$0xff]  ;;  %v107_v12 = vadd.f32 %v141_v10, %v43_v9  ;;  %v45_v14 = vld [vmem:[#allocation2 + $0x28] sm:$0xff]  ;;  %v46_v18 = vld [vmem:[#allocation2 + $0x30] sm:$0xff]  ;;  %p198_p2 = scmp.ne.s32.totalorder %s126_s8, %s197_s9  ;;  %p203_p4 = scmp.lt.s32.totalorder %s197_s9, %s197_s9 }
  0x2b   :  { %112 = vst [vmem:[#allocation7] sm:$0xff] %v104_v3  ;;  %v142_v13 = vld [vmem:[#allocation5 + $0x4] ss:$0 sm:$0xff]  ;;  %v143_v15 = vld [vmem:[#allocation5 + $0x5] ss:$0 sm:$0xff]  ;;  %113 = vst [vmem:[#allocation7 + $0x8] sm:$0xff] %v105_v7 }
  0x2c   :  { %114 = vst [vmem:[#allocation7 + $0x10] sm:$0xff] %v106_v8  ;;  %v108_v16 = vadd.f32 %v142_v13, %v44_v11  ;;  %v109_v17 = vadd.f32 %v143_v15, %v45_v14  ;;  %v144_v19 = vld [vmem:[#allocation5 + $0x6] ss:$0 sm:$0xff]  ;;  %v47_v20 = vld [vmem:[#allocation2 + $0x38] sm:$0xff]  ;;  %115 = vst [vmem:[#allocation7 + $0x18] sm:$0xff] %v107_v12  ;;  %p204_p5 = por %p203_p4, %p202_p3 }
  0x2d   :  { %v110_v21 = vadd.f32 %v144_v19, %v46_v18  ;;  %v145_v22 = vld [vmem:[#allocation5 + $0x7] ss:$0 sm:$0xff] }
  0x2e   :  { %116 = vst [vmem:[#allocation7 + $0x20] sm:$0xff] %v108_v16  ;;  %117 = vst [vmem:[#allocation7 + $0x28] sm:$0xff] %v109_v17  ;;  %v111_v23 = vadd.f32 %v145_v22, %v47_v20  ;;  %p205_p6 = pnand %p204_p5, %p198_p2 }
  0x2f   :  { %118 = vst [vmem:[#allocation7 + $0x30] sm:$0xff] %v110_v21 }
  0x30   :  { %119 = vst [vmem:[#allocation7 + $0x38] sm:$0xff] %v111_v23 }
  0x31   :  { %208 = shalt.err (!%p205_p6)
}
  0x32   :  { %s209_s12 = scalar_lea.hbm %s291_s2, 1024 }
  0x33   :  { %p210_p7 = scmp.ne.s32.totalorder %s291_s2, %s209_s12  ;;  %p213_p8 = scmp.lt.u32.totalorder %s209_s12, %s291_s2 }
  0x35   :  { %p215_p9 = pnand %p213_p8, %p210_p7 }
  0x37   :  { %218 = shalt.err (!%p215_p9)
}
  0x38   :  { %131 = dma.vmem_to_hbm [thread:$0]  %s126_s8, 1024, %s291_s2, [#allocation4], %s226_s19, %s226_s19, %s227_s20  }
  0x39   :  { %223 = dma.done.wait [#allocation4], 1024  }
  0x3a   :  { %224 = vsyncadd [#allocation4], 4294966272 }
  0x3b   :  { %135 = vsyncpa [#allocation3], 1 }
  0x3c   :  { %136 = vsyncpa [#allocation6], 1 }
  0x3d   :  { %137 = vsyncpa [#allocation4], 1 }

</bundles_post_ra>
